<compile_context>
chip_gen: v6e
topology: v6e:2x2x1
jax: 0.10.0
libtpu: 0.0.40
codegen_flags: <defaults>
</compile_context>

<pallas_src>
import jax
import jax.numpy as jnp
from jax.experimental import pallas as pl
from jax.experimental.pallas import tpu as pltpu

_BLOCK_BYTES = 2 << 20   # ~2 MiB blocks sit at the ~85% HBM-roofline knee
_VMEM_LIMIT = 32 << 20


def _copy_kernel(x_ref, o_ref):
    # Identity copy of the current tile into a distinct output buffer.
    o_ref[...] = x_ref[...]


def _round_down(v, m):
    return max(m, (v // m) * m)


def _plan_slab(total, itemsize, row_blk=None, col_blk=None):
    """Pick a lane-dense 2-D view (rows, cols) of the flat buffer and block
    sizes (r_blk, c_blk).  cols is a multiple of 128 and blocks target
    _BLOCK_BYTES.  Returns None when `total` is not a multiple of 128."""
    if total % 128:
        return None
    block_elems = max(8 * 128, _BLOCK_BYTES // itemsize)

    base = total // 128
    divs = set()
    d = 1
    while d * d <= base:
        if base % d == 0:
            divs.add(d)
            divs.add(base // d)
        d += 1

    best = None
    for d in divs:
        cols = 128 * d
        rows = total // cols
        if cols * 8 <= block_elems:
            # Full-width block: one long contiguous DMA per block, 1-D grid.
            c_blk = cols
            r_cap = block_elems // cols
            r_blk = rows if r_cap >= rows else _round_down(r_cap, 8)
        else:
            # Columns too wide for an 8-row block within budget: tile cols.
            r_blk = rows if rows < 8 else 8
            c_blk = _round_down(min(cols, block_elems // 8), 128)
        blk_bytes = r_blk * c_blk * itemsize
        score = (
            min(r_blk, 8),                   # fill all 8 sublanes per vreg
            min(blk_bytes, _BLOCK_BYTES),    # big blocks -> roofline copy
            1 if c_blk == cols else 0,       # full-width, contiguous DMA
            cols,                            # wider columns as tie-break
        )
        if best is None or score > best[0]:
            best = (score, rows, cols, r_blk, c_blk)

    _, rows, cols, r_blk, c_blk = best

    # Honor (sanitized) user overrides, rounded to the (8, 128) tiling rule.
    if row_blk is not None:
        r_blk = _round_down(min(row_blk, rows), 8)
        if r_blk >= rows:
            r_blk = rows
    if col_blk is not None:
        c_blk = _round_down(min(col_blk, cols), 128)
        if c_blk >= cols:
            c_blk = cols

    # Give v7x's second TensorCore work when everything lands in one block.
    if (r_blk >= rows and c_blk >= cols and rows >= 16
            and rows * cols * itemsize > (1 << 20)):
        r_blk = _round_down(pl.cdiv(rows, 2), 8)

    return rows, cols, r_blk, c_blk


def _flatten_copy(x, n, size, row_blk, col_blk):
    total = x.size
    itemsize = jnp.dtype(x.dtype).itemsize

    plan = _plan_slab(total, itemsize, row_blk, col_blk)
    if plan is not None:
        rows, cols, r_blk, c_blk = plan
    else:
        # Flatten sizes not a multiple of 128 (e.g. 3*7*7 = 147): copy the
        # natural (n, size) view; a full-extent last dim is exempt from the
        # (8, 128) block rule.  Tile rows only.
        # TODO(synk): for large n, copy the 128-divisible prefix as a
        # lane-dense slab and handle the tail separately to avoid the masked
        # partial stores on the trailing lanes of every row.
        rows, cols = n, size
        if rows < 8:
            r_blk = rows
        else:
            r_cap = max(8, _BLOCK_BYTES // (cols * itemsize))
            r_blk = rows if r_cap >= rows else _round_down(min(r_cap, rows), 8)
        c_blk = cols

    x_view = jnp.reshape(x, (rows, cols))      # free metadata reshape

    if c_blk >= cols:
        # Full-width blocks -> 1-D grid over rows (fewer per-step overheads).
        grid = (pl.cdiv(rows, r_blk),)
        in_spec = pl.BlockSpec((r_blk, cols), lambda i: (i, 0))
        out_spec = pl.BlockSpec((r_blk, cols), lambda i: (i, 0))
        semantics = ("parallel",)
    else:
        grid = (pl.cdiv(rows, r_blk), pl.cdiv(cols, c_blk))
        in_spec = pl.BlockSpec((r_blk, c_blk), lambda i, j: (i, j))
        out_spec = pl.BlockSpec((r_blk, c_blk), lambda i, j: (i, j))
        semantics = ("parallel", "parallel")

    out = pl.pallas_call(
        _copy_kernel,
        out_shape=jax.ShapeDtypeStruct((rows, cols), x.dtype),
        grid=grid,
        in_specs=[in_spec],
        out_specs=out_spec,
        cost_estimate=pl.CostEstimate(
            flops=0,
            transcendentals=0,
            bytes_accessed=2 * total * itemsize,
        ),
        compiler_params=pltpu.CompilerParams(
            dimension_semantics=semantics,
            vmem_limit_bytes=_VMEM_LIMIT,
        ),
    )(x_view)

    # Final (-1, size) shape is another free metadata reshape.
    return jnp.reshape(out, (n, size))


def flatten_pallas(x, size, *, materialize=False, row_blk=None, col_blk=None):
    """Pallas equivalent of torch `x.view(-1, self.size)`.

    Default: metadata-only reshape (exactly what .view does on a contiguous
    tensor) -- no kernel launch, no HBM traffic.  materialize=True forces a
    tiled Pallas copy into a fresh HBM buffer.
    """
    total = x.size
    assert total % size == 0, "total elements must be divisible by size"
    n = total // size
    if not materialize:
        return jnp.reshape(x, (n, size))
    return _flatten_copy(x, n, size, row_blk, col_blk)


if __name__ == "__main__":
    key = jax.random.PRNGKey(0)

    # Small shapes consistent with a CNN -> linear handoff: NCHW.
    N, C, H, W = 2, 4, 16, 16
    size = C * H * W
    x = jax.random.normal(key, (N, C, H, W), dtype=jnp.float32)
    y_ref = jnp.reshape(x, (-1, size))

    # Default path: metadata-only reshape (no kernel launched).
    y_fast = jax.block_until_ready(flatten_pallas(x, size))
    assert y_fast.shape == (N, size) and y_fast.dtype == x.dtype
    assert bool(jnp.array_equal(y_fast, y_ref))

    # Materializing path: runs the Pallas copy kernel into a distinct buffer.
    y_copy = jax.block_until_ready(flatten_pallas(x, size, materialize=True))
    assert y_copy.shape == (N, size) and y_copy.dtype == x.dtype
    assert bool(jnp.array_equal(y_copy, y_ref))

    # Flatten size that is NOT a multiple of 128 (exercises the fallback path).
    C2, H2, W2 = 3, 7, 7
    size2 = C2 * H2 * W2
    x2 = jax.random.normal(jax.random.PRNGKey(1), (N, C2, H2, W2),
                           dtype=jnp.float32)
    y2 = jax.block_until_ready(flatten_pallas(x2, size2, materialize=True))
    assert y2.shape == (N, size2)
    assert bool(jnp.array_equal(y2, jnp.reshape(x2, (-1, size2))))

    print("KERNEL_OK")
</pallas_src>

<mosaic_0001>
module attributes {stable_mosaic.version = 11 : i64} {
  func.func @_copy_kernel(%arg0: i32, %arg1: memref<8x256xf32, #tpu.memory_space<vmem>>, %arg2: memref<8x256xf32, #tpu.memory_space<vmem>>) attributes {dimension_semantics = [#tpu.dimension_semantics<parallel>], iteration_bounds = array<i64: 1>, scalar_prefetch = 0 : i64, scratch_operands = 0 : i64, tpu.core_type = #tpu.core_type<tc>, window_params = [{transform_indices = @transform_0, window_bounds = array<i64: 8, 256>}, {transform_indices = @transform_1, window_bounds = array<i64: 8, 256>}]} {
    %c0 = arith.constant 0 : index
    %c0_0 = arith.constant 0 : index
    %0 = vector.load %arg1[%c0, %c0_0] : memref<8x256xf32, #tpu.memory_space<vmem>>, vector<8x256xf32>
    %c0_1 = arith.constant 0 : index
    %c0_2 = arith.constant 0 : index
    %1 = vector.load %arg2[%c0_1, %c0_2] : memref<8x256xf32, #tpu.memory_space<vmem>>, vector<8x256xf32>
    tpu.vector_store %arg2[%c0_1, %c0_2], %0 {strides = array<i32>} : memref<8x256xf32, #tpu.memory_space<vmem>>, vector<8x256xf32>,
    return
  }
  func.func @transform_0(%arg0: i32) -> (i32, i32) {
    %c0_i32 = arith.constant 0 : i32
    %c0_i32_0 = arith.constant 0 : i32
    return %arg0, %c0_i32 : i32, i32
  }
  func.func @transform_1(%arg0: i32) -> (i32, i32) {
    %c0_i32 = arith.constant 0 : i32
    %c0_i32_0 = arith.constant 0 : i32
    return %arg0, %c0_i32 : i32, i32
  }
}

</mosaic_0001>

<bundles_post_ra>
// kernel: tpu_custom_call.1
= control target key start
LH: loop header
LB: loop body
LE: loop exit
PB: predicated region body
PF: predicated region fallthrough
CT: control target
= control target key end

     0   :  { %6 = vsyncpa [#allocation3], 0  ;;  %s104_s0 = inlined_call_operand.hbm [shape: f32[8,256], index: 0, kind: input, shape index: {}]   ;;  %s105_s1 = inlined_call_operand.hbm [shape: f32[8,256], index: 1, kind: output, shape index: {}]  }
   0x1   :  { %7 = vsyncpa [#allocation4], 0  ;;  %s86_s6 = smov [#allocation2]  }
   0x2   :  { %s14_s7 = sshll.u32 %s86_s6, 4  ;;  %s15_s7 = int_to_ptr.vmem [resolvable:$true] %s14_s7 }
   0x3   :  { %s50_s8 = scalar_lea.vmem %s15_s7, 256  ;;  %p55_p1 = scmp.lt.s32.totalorder %s15_s7, %s15_s7 }
   0x4   :  { %p51_p0 = scmp.ne.s32.totalorder %s15_s7, %s50_s8  ;;  %p56_p2 = scmp.lt.s32.totalorder %s50_s8, %s50_s8 }
   0x6   :  { %p57_p3 = por %p56_p2, %p55_p1 }
   0x8   :  { %p58_p4 = pnand %p57_p3, %p51_p0 }
   0xa   :  { %61 = shalt.err (!%p58_p4)
}
   0xb   :  { %17 = dma.hbm_to_vmem [thread:$0]  %s104_s0, 256, %s15_s7, [#allocation3]  }
   0xc   :  { %82 = dma.done.wait [#allocation3], 256  }
   0xd   :  { %83 = vsyncadd [#allocation3], 4294967040  ;;  %s87_s11 = smov [#allocation5]   ;;  %v21_v0 = vld [vmem:[#allocation2] sm:$0xff]  ;;  %v22_v1 = vld [vmem:[#allocation2 + $0x8] sm:$0xff] }
   0xe   :  { %s31_s12 = sshll.u32 %s87_s11, 4  ;;  %23 = vst [vmem:[#allocation5] sm:$0xff] %v21_v0  ;;  %24 = vst [vmem:[#allocation5 + $0x8] sm:$0xff] %v22_v1  ;;  %s32_s12 = int_to_ptr.vmem [resolvable:$true] %s31_s12 }
   0xf   :  { %s62_s13 = scalar_lea.vmem %s32_s12, 256  ;;  %p67_p6 = scmp.lt.s32.totalorder %s32_s12, %s32_s12 }
  0x10   :  { %p63_p5 = scmp.ne.s32.totalorder %s32_s12, %s62_s13  ;;  %p68_p7 = scmp.lt.s32.totalorder %s62_s13, %s62_s13 }
  0x12   :  { %p69_p8 = por %p68_p7, %p67_p6 }
  0x14   :  { %p70_p9 = pnand %p69_p8, %p63_p5 }
  0x16   :  { %73 = shalt.err (!%p70_p9)
}
  0x17   :  { %34 = dma.vmem_to_hbm [thread:$0]  %s32_s12, 256, %s105_s1, [#allocation4]  }
  0x18   :  { %84 = dma.done.wait [#allocation4], 256  }
  0x19   :  { %85 = vsyncadd [#allocation4], 4294967040 }
  0x1a   :  { %38 = vsyncpa [#allocation3], 1 }
  0x1b   :  { %39 = vsyncpa [#allocation4], 1 }

</bundles_post_ra>
